<compile_context>
chip_gen: v6e
topology: v6e:2x2x1
jax: 0.10.0
libtpu: 0.0.40
codegen_flags: <defaults>
</compile_context>

<pallas_src>
import functools

import jax
import jax.numpy as jnp
from jax.experimental import pallas as pl
from jax.experimental.pallas import tpu as pltpu

_MiB = 1024 * 1024


def _round_up(x, m):
    return (x + m - 1) // m * m


def _cdiv(a, b):
    return (a + b - 1) // b


# --------------------------- hardware introspection --------------------------


def _tpu_info():
    kind = ""
    try:
        kind = jax.devices()[0].device_kind.lower()
    except Exception:
        pass
    vmem_cap = None
    try:
        vmem_cap = int(pltpu.get_tpu_info().vmem_capacity_bytes)
    except Exception:
        vmem_cap = None
    is_v7 = "7" in kind
    if vmem_cap is None or vmem_cap <= 0:
        vmem_cap = 64 * _MiB if is_v7 else 128 * _MiB
    prefer_bf16 = ("v6" in kind) or is_v7
    return {
        "kind": kind,
        "vmem_cap": vmem_cap,
        "is_v7": is_v7,
        "prefer_bf16": prefer_bf16,
        "num_tc": 2 if is_v7 else 1,
    }


# --------------------------------- kernels -----------------------------------


def _linear_kernel_single_k(x_ref, w_ref, b_ref, o_ref):
    """Whole K in one block: one MXU call + bias add, no accumulator/phases."""
    o_ref[...] = (
        jnp.dot(x_ref[...], w_ref[...], preferred_element_type=jnp.float32)
        + b_ref[...]
    ).astype(o_ref.dtype)


def _linear_kernel_k_reduce(x_ref, w_ref, b_ref, o_ref, acc_ref):
    """K tiled on grid axis 2; bias folded into the accumulator init."""
    k = pl.program_id(2)

    @pl.when(k == 0)
    def _():
        acc_ref[...] = jnp.broadcast_to(b_ref[...], acc_ref.shape)

    acc_ref[...] += jnp.dot(
        x_ref[...], w_ref[...], preferred_element_type=jnp.float32
    )

    @pl.when(k == pl.num_programs(2) - 1)
    def _():
        o_ref[...] = acc_ref[...].astype(o_ref.dtype)


# ------------------------------ tiling helpers --------------------------------


def _vmem_need(tm, tn, tk, in_bytes, out_bytes, k_tiled, buffers=2):
    need = buffers * (tm * tk + tk * tn) * in_bytes   # pipelined x & W tiles
    need += 2 * 8 * tn * 4                            # bias tile, sublane-padded
    if k_tiled:
        need += tm * tn * out_bytes                   # output tile resident over k
        need += tm * tn * 4                           # f32 accumulator scratch
    else:
        need += 2 * tm * tn * out_bytes               # double-buffered output tile
    return need


def _choose_tiles(N, K, in_bytes, out_bytes, budget, sublane, tm_cap):
    """Pick (tm, tn, tk); keep tk == full-K as long as the budget allows."""
    k_full = _round_up(K, 128)
    tm = tm_cap
    tn = min(_round_up(N, 128), 512)
    tk = k_full

    def need(tm_, tn_, tk_):
        return _vmem_need(tm_, tn_, tk_, in_bytes, out_bytes, tk_ < k_full)

    while need(tm, tn, tk) > budget:
        if tn > 256:                                   # cheap: still lane-dense
            tn = max(256, _round_up(tn // 2, 128))
        elif tm > 256:                                 # keep W-reuse next
            tm = max(256, _round_up(tm // 2, sublane))
        elif tk > 512:                                 # only now give up full-K
            tk = max(512, _round_up(tk // 2, 128))
        elif tm > 128:
            tm = max(128, _round_up(tm // 2, sublane))
        elif tk > 128:
            tk = max(128, _round_up(tk // 2, 128))
        elif tn > 128:
            tn = 128
        elif tm > sublane:
            tm = max(sublane, _round_up(tm // 2, sublane))
        else:
            break
    return tm, tn, tk


def _maybe_buffered_spec(shape, index_map, depth):
    """BlockSpec with deeper pipelining if this JAX version supports it."""
    if depth and depth > 2:
        try:
            return pl.BlockSpec(shape, index_map, pipeline_mode=pl.Buffered(depth))
        except TypeError:
            pass
    return pl.BlockSpec(shape, index_map)


# ----------------------------- jitted pallas call -----------------------------


@functools.partial(
    jax.jit,
    static_argnames=(
        "n", "tm", "tn", "tk", "out_dtype", "compute_dtype",
        "vmem_limit", "deep_k_pipeline",
    ),
)
def _linear_padded_call(x, w_pad, b_pad, *, n, tm, tn, tk, out_dtype,
                        compute_dtype, vmem_limit, deep_k_pipeline):
    """y[:M, :n] = x @ w_pad + b_pad, with w_pad/b_pad already padded & cast."""
    M, K = x.shape
    k_pad, n_pad = w_pad.shape

    if compute_dtype is not None and x.dtype != compute_dtype:
        x = x.astype(compute_dtype)

    m_pad = _round_up(M, tm)
    if m_pad != M or k_pad != K:
        x = jnp.pad(x, ((0, m_pad - M), (0, k_pad - K)))

    grid_i = m_pad // tm
    grid_j = n_pad // tn
    grid_k = k_pad // tk

    if grid_k == 1:
        out = pl.pallas_call(
            _linear_kernel_single_k,
            out_shape=jax.ShapeDtypeStruct((m_pad, n_pad), out_dtype),
            grid_spec=pltpu.PrefetchScalarGridSpec(
                num_scalar_prefetch=0,
                grid=(grid_i, grid_j),
                in_specs=[
                    pl.BlockSpec((tm, tk), lambda i, j: (i, 0)),   # x tile
                    pl.BlockSpec((tk, tn), lambda i, j: (0, j)),   # W tile
                    pl.BlockSpec((1, tn), lambda i, j: (0, j)),    # bias tile
                ],
                out_specs=pl.BlockSpec((tm, tn), lambda i, j: (i, j)),
            ),
            compiler_params=pltpu.CompilerParams(
                dimension_semantics=("parallel", "parallel"),
                vmem_limit_bytes=vmem_limit,
            ),
        )(x, w_pad, b_pad)
    else:
        depth = 3 if deep_k_pipeline else 2
        out = pl.pallas_call(
            _linear_kernel_k_reduce,
            out_shape=jax.ShapeDtypeStruct((m_pad, n_pad), out_dtype),
            grid_spec=pltpu.PrefetchScalarGridSpec(
                num_scalar_prefetch=0,
                grid=(grid_i, grid_j, grid_k),
                in_specs=[
                    _maybe_buffered_spec((tm, tk), lambda i, j, k: (i, k), depth),
                    _maybe_buffered_spec((tk, tn), lambda i, j, k: (k, j), depth),
                    pl.BlockSpec((1, tn), lambda i, j, k: (0, j)),
                ],
                out_specs=pl.BlockSpec((tm, tn), lambda i, j, k: (i, j)),
                scratch_shapes=[pltpu.VMEM((tm, tn), jnp.float32)],
            ),
            compiler_params=pltpu.CompilerParams(
                dimension_semantics=("parallel", "parallel", "arbitrary"),
                vmem_limit_bytes=vmem_limit,
            ),
        )(x, w_pad, b_pad)

    if (m_pad, n_pad) != (M, n):
        out = out[:M, :n]
    return out


# ------------------------------ module mirror ---------------------------------


class ClassiferPallas:
    """Mirror of the PyTorch `classifer` module (single nn.Linear)."""

    def __init__(self, input_dim, output_dim, key, compute_dtype="auto"):
        self.input_dim = int(input_dim)
        self.output_dim = int(output_dim)
        info = _tpu_info()

        # Resolve compute dtype: bf16 inputs (f32 MXU accumulation) on v6e/v7x.
        if compute_dtype == "auto":
            compute_dtype = jnp.bfloat16 if info["prefer_bf16"] else None
        if compute_dtype is not None:
            compute_dtype = jnp.dtype(compute_dtype)
            if compute_dtype == jnp.dtype(jnp.float32):
                compute_dtype = None
        self.compute_dtype = compute_dtype

        # ---- PyTorch-style parameter init (weight (N, K), bias (N,)) ----
        kw, kb = jax.random.split(key)
        bound = 1.0 / float(jnp.sqrt(jnp.float32(input_dim)))
        w = jax.random.uniform(kw, (output_dim, input_dim), jnp.float32,
                               -bound, bound)
        b = jax.random.uniform(kb, (output_dim,), jnp.float32, -bound, bound)
        self.w_t = jnp.asarray(w.T)          # (K, N) f32, for reference()
        self.b = b

        # ---- generation-aware tiling (K, N known now; M only at call) ----
        store_dtype = compute_dtype if compute_dtype is not None else jnp.float32
        in_bytes = jnp.dtype(store_dtype).itemsize
        out_bytes = 4                          # conservative (f32 outputs)
        sublane = 16 if in_bytes < 4 else 8
        vmem_cap = info["vmem_cap"]
        budget = (vmem_cap * 3) // 4           # ~96 MiB v5e/v6e, ~48 MiB v7x
        clamp = 100 * _MiB if vmem_cap >= 100 * _MiB else 48 * _MiB
        tm_cap = 512 if vmem_cap >= 100 * _MiB else 256

        tm, tn, tk = _choose_tiles(output_dim, input_dim, in_bytes, out_bytes,
                                   budget, sublane, tm_cap)

        # v7x megacore: give the 'parallel' j axis >= 2 blocks when possible.
        if info["num_tc"] >= 2 and tn % 256 == 0:
            if _round_up(output_dim, 128) // tn <= 1:
                tn //= 2

        k_pad = _round_up(input_dim, tk)
        n_pad = _round_up(output_dim, tn)
        k_tiled = (k_pad // tk) > 1
        deep = k_tiled and vmem_cap >= 100 * _MiB
        bufs = 3 if deep else 2
        need = _vmem_need(tm, tn, tk, in_bytes, out_bytes, k_tiled, bufs)
        if deep and need > budget:
            deep = False
            need = _vmem_need(tm, tn, tk, in_bytes, out_bytes, k_tiled, 2)
        vmem_limit = int(min(max(need * 5 // 4, 16 * _MiB), clamp))

        self._tm, self._tn, self._tk = tm, tn, tk
        self._sublane = sublane
        self._vmem_limit = vmem_limit
        self._deep_k_pipeline = bool(deep)

        # ---- one-time weight/bias pad + cast (kept out of the hot path) ----
        w_t = self.w_t.astype(store_dtype)
        if (k_pad, n_pad) != (input_dim, output_dim):
            w_t = jnp.pad(w_t, ((0, k_pad - input_dim), (0, n_pad - output_dim)))
        bias = jnp.reshape(b, (1, output_dim)).astype(jnp.float32)
        if n_pad != output_dim:
            bias = jnp.pad(bias, ((0, 0), (0, n_pad - output_dim)))
        self.w_t_padded = w_t          # (k_pad, n_pad), compute dtype
        self.bias_padded = bias        # (1, n_pad), f32

    def __call__(self, x):
        orig_shape = x.shape
        if x.ndim == 1:
            x2 = x[None, :]
        elif x.ndim == 2:
            x2 = x
        else:
            x2 = x.reshape(-1, orig_shape[-1])

        # Spread M evenly over i-blocks so m_pad ~= M (no big x pad copies).
        M = x2.shape[0]
        n_blocks = max(1, _cdiv(M, self._tm))
        tm = min(self._tm, _round_up(max(_cdiv(M, n_blocks), 1), self._sublane))

        out = _linear_padded_call(
            x2, self.w_t_padded, self.bias_padded,
            n=self.output_dim, tm=tm, tn=self._tn, tk=self._tk,
            out_dtype=jnp.dtype(x.dtype),
            compute_dtype=self.compute_dtype,
            vmem_limit=self._vmem_limit,
            deep_k_pipeline=self._deep_k_pipeline,
        )

        if x.ndim == 1:
            return out[0]
        if x.ndim > 2:
            return out.reshape(*orig_shape[:-1], self.output_dim)
        return out

    def reference(self, x):
        return x @ self.w_t + self.b[None, :]


# ----------------------------------- demo -------------------------------------


if __name__ == "__main__":
    key = jax.random.PRNGKey(0)
    k_param, k_x, k_param2, k_x2 = jax.random.split(key, 4)

    # Small shapes consistent with the module's 2-D Linear input.
    batch, input_dim, output_dim = 8, 256, 128

    # Exact f32 path (tight tolerance check).
    model = ClassiferPallas(input_dim, output_dim, k_param, compute_dtype=None)
    x = jax.random.normal(k_x, (batch, input_dim), jnp.float32)
    out = jax.block_until_ready(model(x))
    ref = model.reference(x)
    assert out.shape == (batch, output_dim)
    assert jnp.allclose(out, ref, atol=1e-4, rtol=1e-4), "mismatch vs reference"

    # Ragged shapes + generation-auto compute dtype (bf16 on v6e/v7x).
    model2 = ClassiferPallas(200, 100, k_param2)          # compute_dtype="auto"
    x2 = jax.random.normal(k_x2, (5, 200), jnp.float32)
    out2 = jax.block_until_ready(model2(x2))
    ref2 = model2.reference(x2)
    assert out2.shape == (5, 100)
    if model2.compute_dtype == jnp.dtype(jnp.bfloat16):
        tol = dict(atol=5e-2, rtol=5e-2)   # expected bf16 input rounding
    else:
        tol = dict(atol=1e-4, rtol=1e-4)
    assert jnp.allclose(out2, ref2, **tol), "ragged mismatch vs reference"

    print("KERNEL_OK")
</pallas_src>

<mosaic_0001>
module attributes {stable_mosaic.version = 11 : i64} {
  func.func @_linear_kernel_single_k(%arg0: i32, %arg1: i32, %arg2: memref<8x256xf32, #tpu.memory_space<vmem>>, %arg3: memref<256x128xf32, #tpu.memory_space<vmem>>, %arg4: memref<1x128xf32, #tpu.memory_space<vmem>>, %arg5: memref<8x128xf32, #tpu.memory_space<vmem>>) attributes {dimension_semantics = [#tpu.dimension_semantics<parallel>, #tpu.dimension_semantics<parallel>], iteration_bounds = array<i64: 1, 1>, scalar_prefetch = 0 : i64, scratch_operands = 0 : i64, tpu.core_type = #tpu.core_type<tc>, window_params = [{transform_indices = @transform_0, window_bounds = array<i64: 8, 256>}, {transform_indices = @transform_1, window_bounds = array<i64: 256, 128>}, {transform_indices = @transform_2, window_bounds = array<i64: 1, 128>}, {transform_indices = @transform_3, window_bounds = array<i64: 8, 128>}]} {
    %c0 = arith.constant 0 : index
    %c0_0 = arith.constant 0 : index
    %0 = vector.load %arg2[%c0, %c0_0] : memref<8x256xf32, #tpu.memory_space<vmem>>, vector<8x256xf32>
    %c0_1 = arith.constant 0 : index
    %c0_2 = arith.constant 0 : index
    %1 = vector.load %arg3[%c0_1, %c0_2] : memref<256x128xf32, #tpu.memory_space<vmem>>, vector<256x128xf32>
    %cst = arith.constant dense<0.000000e+00> : vector<8x128xf32>
    %2 = tpu.matmul %0, %1, %cst {dimension_numbers = #tpu.dot_dimension_numbers<[1], [0], [0], [1], [0, 0, 1, 1], [], []>} : vector<8x256xf32>, vector<256x128xf32>, vector<8x128xf32> -> vector<8x128xf32>
    %c0_3 = arith.constant 0 : index
    %c0_4 = arith.constant 0 : index
    %3 = vector.load %arg4[%c0_3, %c0_4] : memref<1x128xf32, #tpu.memory_space<vmem>>, vector<1x128xf32>
    %4 = vector.broadcast %3 : vector<1x128xf32> to vector<8x128xf32>
    %5 = arith.addf %2, %4 : vector<8x128xf32>
    %c0_5 = arith.constant 0 : index
    %c0_6 = arith.constant 0 : index
    %6 = vector.load %arg5[%c0_5, %c0_6] : memref<8x128xf32, #tpu.memory_space<vmem>>, vector<8x128xf32>
    tpu.vector_store %arg5[%c0_5, %c0_6], %5 {strides = array<i32>} : memref<8x128xf32, #tpu.memory_space<vmem>>, vector<8x128xf32>,
    return
  }
  func.func @transform_0(%arg0: i32, %arg1: i32) -> (i32, i32) {
    %c0_i32 = arith.constant 0 : i32
    %c0_i32_0 = arith.constant 0 : i32
    return %arg0, %c0_i32 : i32, i32
  }
  func.func @transform_1(%arg0: i32, %arg1: i32) -> (i32, i32) {
    %c0_i32 = arith.constant 0 : i32
    %c0_i32_0 = arith.constant 0 : i32
    return %c0_i32, %arg1 : i32, i32
  }
  func.func @transform_2(%arg0: i32, %arg1: i32) -> (i32, i32) {
    %c0_i32 = arith.constant 0 : i32
    %c0_i32_0 = arith.constant 0 : i32
    return %c0_i32, %arg1 : i32, i32
  }
  func.func @transform_3(%arg0: i32, %arg1: i32) -> (i32, i32) {
    %c0_i32 = arith.constant 0 : i32
    return %arg0, %arg1 : i32, i32
  }
}

</mosaic_0001>

<bundles_post_ra>
// kernel: _linear_padded_call.1
= control target key start
LH: loop header
LB: loop body
LE: loop exit
PB: predicated region body
PF: predicated region fallthrough
CT: control target
= control target key end

     0   :  { %8 = vsyncpa [#allocation3], 0  ;;  %s313_s0 = inlined_call_operand.hbm [shape: f32[8,256], index: 0, kind: input, shape index: {}]   ;;  %s314_s1 = inlined_call_operand.hbm [shape: f32[256,128], index: 1, kind: input, shape index: {}]   ;;  %s315_s2 = inlined_call_operand.vmem [shape: f32[1,128], index: 2, kind: input, shape index: {}]   ;;  %s316_s3 = inlined_call_operand.hbm [shape: f32[8,128], index: 3, kind: output, shape index: {}]  }
   0x1   :  { %9 = vsyncpa [#allocation6], 0 }
   0x2   :  { %10 = vsyncpa [#allocation4], 0  ;;  %s276_s12 = smov [#allocation2]   ;;  %s277_s14 = smov [#allocation5]  }
   0x3   :  { %s17_s13 = sshll.u32 %s276_s12, 4  ;;  %s26_s15 = sshll.u32 %s277_s14, 4  ;;  %s18_s13 = int_to_ptr.vmem [resolvable:$true] %s17_s13  ;;  %s27_s15 = int_to_ptr.vmem [resolvable:$true] %s26_s15 }
   0x4   :  { %s218_s16 = scalar_lea.vmem %s18_s13, 256  ;;  %p223_p1 = scmp.lt.s32.totalorder %s18_s13, %s18_s13 }
   0x5   :  { %p219_p0 = scmp.ne.s32.totalorder %s18_s13, %s218_s16  ;;  %p224_p2 = scmp.lt.s32.totalorder %s218_s16, %s218_s16 }
   0x7   :  { %p225_p3 = por %p224_p2, %p223_p1 }
   0x9   :  { %p226_p4 = pnand %p225_p3, %p219_p0 }
   0xb   :  { %229 = shalt.err (!%p226_p4)
}
   0xc   :  { %20 = dma.hbm_to_vmem [thread:$0]  %s313_s0, 256, %s18_s13, [#allocation3]  }
   0xd   :  { %s238_s19 = scalar_lea.vmem %s27_s15, 4096  ;;  %p243_p6 = scmp.lt.s32.totalorder %s27_s15, %s27_s15 }
   0xe   :  { %p239_p5 = scmp.ne.s32.totalorder %s27_s15, %s238_s19  ;;  %p244_p7 = scmp.lt.s32.totalorder %s238_s19, %s238_s19 }
  0x10   :  { %p245_p8 = por %p244_p7, %p243_p6 }
  0x12   :  { %p246_p9 = pnand %p245_p8, %p239_p5 }
  0x14   :  { %249 = shalt.err (!%p246_p9)
}
  0x15   :  { %s278_s20 = smov 128   ;;  %s279_s21 = smov 8  }
  0x16   :  { %32 = dma.hbm_to_vmem [thread:$0]  %s314_s1, 4096, %s27_s15, [#allocation6], %s278_s20, %s278_s20, %s279_s21  }
  0x17   :  { %270 = dma.done.wait [#allocation3], 256  }
  0x18   :  { %271 = vsyncadd [#allocation3], 4294967040 }
  0x19   :  { %272 = dma.done.wait [#allocation6], 4096  }
  0x1a   :  { %273 = vsyncadd [#allocation6], 4294963200  ;;  %v74_v0 = vld [vmem:[#allocation5 + $0xf8] sm:$0xff]  ;;  %v73_v2 = vld [vmem:[#allocation5 + $0xf0] sm:$0xff]  ;;  %s280_s24 = smov [#allocation7]  }
  0x1b   :  { %v58_v1 = vld [vmem:[#allocation5 + $0x78] sm:$0xff]  ;;  %170 = vmatprep.subr.mxu0 %v74_v0  ;;  %v57_v3 = vld [vmem:[#allocation5 + $0x70] sm:$0xff]  ;;  %v72_v4 = vld [vmem:[#allocation5 + $0xe8] sm:$0xff]  ;;  %s159_s25 = sshll.u32 %s280_s24, 4  ;;  %s160_s25 = int_to_ptr.vmem [resolvable:$true] %s159_s25 }
  0x1c   :  { %171 = vmatpush3.msra.mxu0 %v58_v1  ;;  %v56_v5 = vld [vmem:[#allocation5 + $0x68] sm:$0xff]  ;;  %v71_v6 = vld [vmem:[#allocation5 + $0xe0] sm:$0xff]  ;;  %v70_v8 = vld [vmem:[#allocation5 + $0xd8] sm:$0xff]  ;;  %s250_s26 = scalar_lea.vmem %s160_s25, 128  ;;  %p255_p11 = scmp.lt.s32.totalorder %s160_s25, %s160_s25 }
  0x1d   :  { %172 = vmatprep.subr.mxu0 %v73_v2  ;;  %v55_v7 = vld [vmem:[#allocation5 + $0x60] sm:$0xff]  ;;  %v54_v9 = vld [vmem:[#allocation5 + $0x58] sm:$0xff]  ;;  %v69_v10 = vld [vmem:[#allocation5 + $0xd0] sm:$0xff]  ;;  %p251_p10 = scmp.ne.s32.totalorder %s160_s25, %s250_s26  ;;  %p256_p12 = scmp.lt.s32.totalorder %s250_s26, %s250_s26 }
  0x1e   :  { %173 = vmatpush3.msra.mxu0 %v57_v3  ;;  %v53_v11 = vld [vmem:[#allocation5 + $0x50] sm:$0xff]  ;;  %v68_v12 = vld [vmem:[#allocation5 + $0xc8] sm:$0xff]  ;;  %v42_v13 = vld [vmem:[#allocation2 + $0x8] sm:$0xff] }
  0x1f   :  { %174 = vmatprep.subr.mxu0 %v72_v4  ;;  %v52_v14 = vld [vmem:[#allocation5 + $0x48] sm:$0xff]  ;;  %146 = vmatprep.mubr.f32.mxu0 %v42_v13  ;;  %v67_v15 = vld [vmem:[#allocation5 + $0xc0] sm:$0xff]  ;;  %v66_v17 = vld [vmem:[#allocation5 + $0xb8] sm:$0xff]  ;;  %p257_p13 = por %p256_p12, %p255_p11 }
  0x20   :  { %175 = vmatpush3.msra.mxu0 %v56_v5  ;;  %v51_v16 = vld [vmem:[#allocation5 + $0x40] sm:$0xff]  ;;  %v50_v18 = vld [vmem:[#allocation5 + $0x38] sm:$0xff]  ;;  %v65_v19 = vld [vmem:[#allocation5 + $0xb0] sm:$0xff] }
  0x21   :  { %176 = vmatprep.subr.mxu0 %v71_v6  ;;  %v49_v20 = vld [vmem:[#allocation5 + $0x30] sm:$0xff]  ;;  %v64_v21 = vld [vmem:[#allocation5 + $0xa8] sm:$0xff]  ;;  %v63_v23 = vld [vmem:[#allocation5 + $0xa0] sm:$0xff]  ;;  %p258_p0 = pnand %p257_p13, %p251_p10 }
  0x22   :  { %177 = vmatpush3.msra.mxu0 %v55_v7  ;;  %v48_v22 = vld [vmem:[#allocation5 + $0x28] sm:$0xff]  ;;  %v47_v24 = vld [vmem:[#allocation5 + $0x20] sm:$0xff]  ;;  %v62_v25 = vld [vmem:[#allocation5 + $0x98] sm:$0xff] }
  0x23   :  { %178 = vmatprep.subr.mxu0 %v70_v8  ;;  %v46_v26 = vld [vmem:[#allocation5 + $0x18] sm:$0xff]  ;;  %v61_v27 = vld [vmem:[#allocation5 + $0x90] sm:$0xff]  ;;  %v60_v29 = vld [vmem:[#allocation5 + $0x88] sm:$0xff] }
  0x24   :  { %179 = vmatpush3.msra.mxu0 %v54_v9  ;;  %v45_v28 = vld [vmem:[#allocation5 + $0x10] sm:$0xff]  ;;  %v44_v30 = vld [vmem:[#allocation5 + $0x8] sm:$0xff]  ;;  %v59_v31 = vld [vmem:[#allocation5 + $0x80] sm:$0xff] }
  0x25   :  { %180 = vmatprep.subr.mxu0 %v69_v10  ;;  %v43_v32 = vld [vmem:[#allocation5] sm:$0xff]  ;;  %v41_v33 = vld [vmem:[#allocation2] sm:$0xff] }
  0x26   :  { %181 = vmatpush3.msra.mxu0 %v53_v11  ;;  %v169_v35 = vld [vmem:[%s315_s2] ss:$0 sm:$0xff] }
  0x27   :  { %182 = vmatprep.subr.mxu0 %v68_v12 }
  0x28   :  { %183 = vmatpush3.msra.mxu0 %v52_v14 }
  0x29   :  { %184 = vmatprep.subr.mxu0 %v67_v15 }
  0x2a   :  { %185 = vmatpush3.msra.mxu0 %v51_v16 }
  0x2b   :  { %186 = vmatprep.subr.mxu0 %v66_v17 }
  0x2c   :  { %187 = vmatpush3.msra.mxu0 %v50_v18 }
  0x2d   :  { %188 = vmatprep.subr.mxu0 %v65_v19 }
  0x2e   :  { %189 = vmatpush3.msra.mxu0 %v49_v20 }
  0x2f   :  { %190 = vmatprep.subr.mxu0 %v64_v21 }
  0x30   :  { %191 = vmatpush3.msra.mxu0 %v48_v22 }
  0x31   :  { %192 = vmatprep.subr.mxu0 %v63_v23 }
  0x32   :  { %193 = vmatpush3.msra.mxu0 %v47_v24 }
  0x33   :  { %194 = vmatprep.subr.mxu0 %v62_v25 }
  0x34   :  { %195 = vmatpush3.msra.mxu0 %v46_v26 }
  0x35   :  { %196 = vmatprep.subr.mxu0 %v61_v27 }
  0x36   :  { %197 = vmatpush3.msra.mxu0 %v45_v28 }
  0x37   :  { %198 = vmatprep.subr.mxu0 %v60_v29 }
  0x38   :  { %199 = vmatpush3.msra.mxu0 %v44_v30 }
  0x39   :  { %200 = vmatprep.subr.mxu0 %v59_v31 }
  0x3a   :  { %201 = vmatpush3.msra.mxu0 %v43_v32 }
  0x3b   :  { %147 = vmatmul.mubr.f32.vlgmr.msra.gmra.mxu0 %v41_v33 }
  0xfb   :  { %v202_v34 = vpop.f32.mrf.mxu0 }
  0xfd   :  { %v203_v36 = vpop.f32.mrf.mxu0 }
  0xfe   :  { %v204_v37 = vadd.f32 %v203_v36, %v202_v34 }
 0x100   :  { %v149_v38 = vadd.f32 %v204_v37, %v169_v35 }
 0x102   :  { %152 = vst [vmem:[#allocation7] sm:$0xff] %v149_v38 }
 0x103   :  { %261 = shalt.err (!%p258_p0)
}
 0x104   :  { %162 = dma.vmem_to_hbm [thread:$0]  %s160_s25, 128, %s316_s3, [#allocation4]  }
 0x105   :  { %274 = dma.done.wait [#allocation4], 128  }
 0x106   :  { %275 = vsyncadd [#allocation4], 4294967168 }
 0x107   :  { %166 = vsyncpa [#allocation3], 1 }
 0x108   :  { %167 = vsyncpa [#allocation6], 1 }
 0x109   :  { %168 = vsyncpa [#allocation4], 1 }

</bundles_post_ra>
